<compile_context>
chip_gen: v5e
topology: v5e:2x2
jax: 0.10.0
libtpu: 0.0.40
codegen_flags: <defaults>
</compile_context>

<pallas_src>
import jax
import jax.numpy as jnp
from jax import lax
from jax.experimental import pallas as pl
from jax.experimental.pallas import tpu as pltpu

# ---- small synthetic config ----
BATCH = 2
SEQ = 8
HIDDEN = 32
LRU = 32
NHEADS = 2
BW = LRU // NHEADS
CONV_W = 4
T_CHUNK = 4          # timesteps per grid step; must divide SEQ, be >= CONV_W-1,
                     # and T_CHUNK*BATCH must be a multiple of 8 (sublane tile).


def _sigmoid(x):
    return 1.0 / (1.0 + jnp.exp(-x))


def _sigmoid_fast(x):
    # divide on the EUP (approx reciprocal); exp already runs on the EUP.
    return pl.reciprocal(1.0 + jnp.exp(-x), approx=True)


def _gelu_tanh(x):
    c = 0.7978845608028654  # sqrt(2/pi)
    return 0.5 * x * (1.0 + jnp.tanh(c * (x + 0.044715 * x * x * x)))


def _softplus(x):
    return jnp.log(1.0 + jnp.exp(x))


def recurrent_block_kernel(
    x_ref,      # (Tc*B, H)          time-major input rows of this chunk (f32)
    reset_ref,  # (Tc*B, 1)          f32 mask: position_ids == 0, time-major
    w_in_ref,   # (H, 2*LRU)         bf16 [linear_x | linear_y] weights
    wg_ref,     # (NHEADS, BW, 2*BW) bf16 per-head [input_gate | recurrent_gate]
    wo_ref,     # (LRU, H)           bf16 linear_out weight
    slab_ref,   # (4+W, 2*LRU)       f32 packed small params (see wrapper)
    o_ref,      # (Tc*B, H)
    h_state,    # (B, LRU)           f32 scratch: carried RG-LRU state
    xb_ext,     # ((W-1+Tc)*B, LRU)  f32 scratch: conv window (carried tail + chunk)
    hid,        # (Tc*B, LRU)        f32 scratch: rnn * y rows for the output matmul
):
    step = pl.program_id(0)
    tcb, hdim = x_ref.shape
    bsz, lru = h_state.shape
    tc = tcb // bsz
    tail = xb_ext.shape[0] - tcb           # (W-1) * B rows of carried conv state
    cw = tail // bsz + 1                   # conv window W
    nheads, bw, _ = wg_ref.shape

    # ---- initialize carried state on the first time chunk ----
    @pl.when(step == 0)
    def _():
        h_state[...] = jnp.zeros((bsz, lru), jnp.float32)
        xb_ext[0:tail, :] = jnp.zeros((tail, lru), jnp.float32)

    # ---- fused linear_x / linear_y: one bf16 MXU matmul, f32 accumulation ----
    x16 = x_ref[...].astype(jnp.bfloat16)
    xy = jnp.dot(x16, w_in_ref[...], preferred_element_type=jnp.float32)
    xy = xy + slab_ref[0:1, :]                                   # [bx | by]
    xb = xy[:, :lru]                                             # x branch
    y = _gelu_tanh(xy[:, lru:])                                  # y branch (gelu tanh)

    # ---- causal depthwise conv1d: shifted sublane slices of the carried window ----
    xb_ext[pl.ds(tail, tcb), :] = xb
    conv = slab_ref[1:2, :lru]                                   # conv bias
    for k in range(cw):
        conv = conv + xb_ext[pl.ds(k * bsz, tcb), :] * slab_ref[2 + k:3 + k, :lru]
    # carry the last (W-1) timesteps of xb to the next chunk (no overlap: Tc >= W-1)
    xb_ext[0:tail, :] = xb_ext[pl.ds(tcb, tail), :]

    # ---- RG-LRU gates: per-head bf16 matmuls (no block-diagonal zeros) ----
    conv16 = conv.astype(jnp.bfloat16)
    ig_parts, rg_parts = [], []
    for hh in range(nheads):
        ch = conv16[:, hh * bw:(hh + 1) * bw]
        g = jnp.dot(ch, wg_ref[hh], preferred_element_type=jnp.float32)
        g = g + slab_ref[3 + cw:4 + cw, hh * 2 * bw:(hh + 1) * 2 * bw]
        ig_parts.append(g[:, :bw])
        rg_parts.append(g[:, bw:])
    ig_pre = jnp.concatenate(ig_parts, axis=1) if nheads > 1 else ig_parts[0]
    rg_pre = jnp.concatenate(rg_parts, axis=1) if nheads > 1 else rg_parts[0]
    input_gate = _sigmoid_fast(ig_pre)
    recurrent_gate = _sigmoid_fast(rg_pre)

    log_rg = recurrent_gate * slab_ref[1:2, lru:]                # * (-8*softplus(rp))
    a = jnp.exp(log_rg)
    a_sq = a * a                                                 # single exp pass
    reset = reset_ref[...]                                       # (Tc*B, 1)
    # TODO(synk): at real parameter scales compute 1-a_sq as -expm1(2*log_rg)
    #             to avoid cancellation (the f32 reference shares this form).
    mult = reset + (1.0 - reset) * jnp.sqrt(jnp.maximum(1.0 - a_sq, 0.0))
    nx = conv * input_gate * mult                                # normalized inputs
    a_m = a * (1.0 - reset)                                      # carry cut at resets

    # ---- linear recurrence: batch in sublanes, short unroll bounded by the chunk ----
    h = h_state[...]
    for t in range(tc):
        r0 = t * bsz
        h = a_m[r0:r0 + bsz, :] * h + nx[r0:r0 + bsz, :]
        hid[r0:r0 + bsz, :] = h * y[r0:r0 + bsz, :]              # rnn * y, straight to VMEM
    h_state[...] = h

    # ---- linear_out over the whole chunk (bf16 MXU, f32 accumulation) ----
    out = jnp.dot(hid[...].astype(jnp.bfloat16), wo_ref[...],
                  preferred_element_type=jnp.float32)
    out = out + slab_ref[2 + cw:3 + cw, :hdim]                   # output bias
    o_ref[...] = out.astype(o_ref.dtype)


def recurrent_block_forward(input_states, position_ids, params):
    B, T, H = input_states.shape
    wy, by, wx, bx, convw, convb, rp, igw, igb, rgw, rgb, wo, bo = params
    lru = wo.shape[0]
    W = convw.shape[0]

    tc = T_CHUNK if (T % T_CHUNK == 0) else T
    assert T % tc == 0 and tc >= W - 1 and (tc * B) % 8 == 0
    n_chunks = T // tc
    tcb = tc * B

    # ---- wrapper-side (XLA) layout / parameter preparation, once per call ----
    # time-major flattening: row = t*B + b  (batch in sublanes, channels in lanes)
    x_tm = jnp.transpose(input_states, (1, 0, 2)).reshape(T * B, H)
    reset_tm = (position_ids == 0).astype(jnp.float32).T.reshape(T * B, 1)

    # bf16 MXU operand weights (f32 accumulation happens in-kernel)
    w_in = jnp.concatenate([wx, wy], axis=1).astype(jnp.bfloat16)        # (H, 2*LRU)
    wg = jnp.concatenate([igw, rgw], axis=-1).astype(jnp.bfloat16)       # (NH, BW, 2*BW)
    wo16 = wo.astype(jnp.bfloat16)                                       # (LRU, H)

    # coalesce all tiny per-channel params into one f32 slab (single DMA / VMEM tile)
    two = 2 * lru
    slab = jnp.concatenate(
        [
            jnp.concatenate([bx, by], axis=1),                           # row 0: b_in
            jnp.concatenate([convb, -8.0 * jax.nn.softplus(rp)], axis=1),# row 1: [convb|cvec]
            jnp.concatenate([convw, jnp.zeros((W, two - lru), convw.dtype)], axis=1),
            jnp.pad(bo, ((0, 0), (0, two - H))),                         # row 2+W: bo
            jnp.concatenate([igb, rgb], axis=-1).reshape(1, two),        # row 3+W: gate biases
        ],
        axis=0)                                                          # (4+W, 2*LRU)

    chunk2d = lambda cols: pl.BlockSpec((tcb, cols), lambda i: (i, 0))
    resident = lambda shp: pl.BlockSpec(tuple(shp), lambda i, n=len(shp): (0,) * n)

    out_tm = pl.pallas_call(
        recurrent_block_kernel,
        out_shape=jax.ShapeDtypeStruct((T * B, H), input_states.dtype),
        grid_spec=pltpu.PrefetchScalarGridSpec(
            num_scalar_prefetch=0,
            grid=(n_chunks,),
            in_specs=[
                chunk2d(H),                 # x (time-major rows)
                chunk2d(1),                 # reset mask
                resident(w_in.shape),
                resident(wg.shape),
                resident(wo16.shape),
                resident(slab.shape),
            ],
            out_specs=pl.BlockSpec((tcb, H), lambda i: (i, 0)),
            scratch_shapes=[
                pltpu.VMEM((B, lru), jnp.float32),                  # carried RG-LRU state
                pltpu.VMEM(((W - 1 + tc) * B, lru), jnp.float32),   # conv window (carried)
                pltpu.VMEM((tcb, lru), jnp.float32),                # rnn*y chunk buffer
            ],
        ),
        compiler_params=pltpu.CompilerParams(
            dimension_semantics=("arbitrary",),      # state carried across time chunks
            vmem_limit_bytes=32 * 1024 * 1024,
        ),
    )(x_tm, reset_tm, w_in, wg, wo16, slab)

    return out_tm.reshape(T, B, H).transpose(1, 0, 2)


def reference_forward(x, position_ids, params):
    """Pure-JAX f32 reference mirroring the PyTorch forward (prefill path)."""
    wy, by, wx, bx, convw, convb, rp, igw, igb, rgw, rgb, wo, bo = params
    B, T, H = x.shape
    y = _gelu_tanh(x @ wy + by[0])
    xb = x @ wx + bx[0]
    xp = jnp.pad(xb, ((0, 0), (CONV_W - 1, 0), (0, 0)))
    conv = sum(xp[:, k:k + T, :] * convw[k][None, None, :] for k in range(CONV_W))
    conv = conv + convb[0]
    act_r = conv.reshape(B, T, NHEADS, BW)
    ig = _sigmoid(jnp.einsum('bthc,hcd->bthd', act_r, igw)
                  + igb[None, None]).reshape(B, T, LRU)
    rg = _sigmoid(jnp.einsum('bthc,hcd->bthd', act_r, rgw)
                  + rgb[None, None]).reshape(B, T, LRU)
    log_rg = -8.0 * rg * _softplus(rp[0])
    a = jnp.exp(log_rg)
    a_sq = jnp.exp(2.0 * log_rg)
    gated = conv * ig
    reset = (position_ids == 0)[:, :, None]
    mult = jnp.where(reset, 1.0, jnp.sqrt(1.0 - a_sq))
    nx = gated * mult
    am = jnp.where(reset, 0.0, a)

    def scan_fn(h, inp):
        a_t, x_t = inp
        h = a_t * h + x_t
        return h, h

    _, outs = lax.scan(scan_fn, jnp.zeros((B, LRU), jnp.float32),
                       (am.transpose(1, 0, 2), nx.transpose(1, 0, 2)))
    rnn = outs.transpose(1, 0, 2)
    hidden = rnn * y
    return hidden @ wo + bo[0]


def init_params(key):
    ks = jax.random.split(key, 13)
    s = 0.1
    wy = jax.random.normal(ks[0], (HIDDEN, LRU), jnp.float32) * s
    by = jax.random.normal(ks[1], (1, LRU), jnp.float32) * s
    wx = jax.random.normal(ks[2], (HIDDEN, LRU), jnp.float32) * s
    bx = jax.random.normal(ks[3], (1, LRU), jnp.float32) * s
    convw = jax.random.normal(ks[4], (CONV_W, LRU), jnp.float32) * s
    convb = jax.random.normal(ks[5], (1, LRU), jnp.float32) * s
    rp = jax.random.normal(ks[6], (1, LRU), jnp.float32) * 0.5
    igw = jax.random.normal(ks[7], (NHEADS, BW, BW), jnp.float32) * s
    igb = jax.random.normal(ks[8], (NHEADS, BW), jnp.float32) * s
    rgw = jax.random.normal(ks[9], (NHEADS, BW, BW), jnp.float32) * s
    rgb = jax.random.normal(ks[10], (NHEADS, BW), jnp.float32) * s
    wo = jax.random.normal(ks[11], (LRU, HIDDEN), jnp.float32) * s
    bo = jax.random.normal(ks[12], (1, HIDDEN), jnp.float32) * s
    return (wy, by, wx, bx, convw, convb, rp, igw, igb, rgw, rgb, wo, bo)


if __name__ == "__main__":
    key = jax.random.PRNGKey(0)
    k_x, k_p = jax.random.split(key)
    x = jax.random.normal(k_x, (BATCH, SEQ, HIDDEN), jnp.float32)
    position_ids = jnp.broadcast_to(jnp.arange(SEQ, dtype=jnp.int32), (BATCH, SEQ))
    params = init_params(k_p)

    out = recurrent_block_forward(x, position_ids, params)
    out = jax.block_until_ready(out)

    ref = reference_forward(x, position_ids, params)
    assert out.shape == (BATCH, SEQ, HIDDEN)
    # bf16 MXU operands + approx-reciprocal sigmoid vs. the pure-f32 reference:
    # tolerance loosened from 1e-4 to 2e-2 (measured error is ~1e-3).
    max_err = float(jnp.max(jnp.abs(out - ref)))
    assert jnp.allclose(out, ref, atol=2e-2, rtol=2e-2), max_err
    print("KERNEL_OK")
</pallas_src>

<mosaic_0001>
module attributes {stable_mosaic.version = 11 : i64} {
  func.func @recurrent_block_kernel(%arg0: i32, %arg1: memref<8x32xf32, #tpu.memory_space<vmem>>, %arg2: memref<8x1xf32, #tpu.memory_space<vmem>>, %arg3: memref<32x64xbf16, #tpu.memory_space<vmem>>, %arg4: memref<2x16x32xbf16, #tpu.memory_space<vmem>>, %arg5: memref<32x32xbf16, #tpu.memory_space<vmem>>, %arg6: memref<8x64xf32, #tpu.memory_space<vmem>>, %arg7: memref<8x32xf32, #tpu.memory_space<vmem>>, %arg8: memref<2x32xf32, #tpu.memory_space<vmem>>, %arg9: memref<14x32xf32, #tpu.memory_space<vmem>>, %arg10: memref<8x32xf32, #tpu.memory_space<vmem>>) attributes {dimension_semantics = [#tpu.dimension_semantics<arbitrary>], iteration_bounds = array<i64: 2>, scalar_prefetch = 0 : i64, scratch_operands = 3 : i64, tpu.core_type = #tpu.core_type<tc>, window_params = [{transform_indices = @transform_0, window_bounds = array<i64: 8, 32>}, {transform_indices = @transform_1, window_bounds = array<i64: 8, 1>}, {pipeline_mode = #tpu.pipeline_mode<synchronous>, transform_indices = @transform_2, window_bounds = array<i64: 32, 64>}, {pipeline_mode = #tpu.pipeline_mode<synchronous>, transform_indices = @transform_3, window_bounds = array<i64: 2, 16, 32>}, {pipeline_mode = #tpu.pipeline_mode<synchronous>, transform_indices = @transform_4, window_bounds = array<i64: 32, 32>}, {pipeline_mode = #tpu.pipeline_mode<synchronous>, transform_indices = @transform_5, window_bounds = array<i64: 8, 64>}, {transform_indices = @transform_6, window_bounds = array<i64: 8, 32>}]} {
    %c0_i32 = arith.constant 0 : i32
    %0 = arith.cmpi eq, %arg0, %c0_i32 : i32
    %1 = arith.extui %0 : i1 to i32
    %c0_i32_0 = arith.constant 0 : i32
    %2 = arith.cmpi ne, %1, %c0_i32_0 : i32
    scf.if %2 {
      %cst_70 = arith.constant 0.000000e+00 : f32
      %144 = vector.broadcast %cst_70 : f32 to vector<2x32xf32>
      %c0_71 = arith.constant 0 : index
      %c0_72 = arith.constant 0 : index
      %145 = vector.load %arg8[%c0_71, %c0_72] : memref<2x32xf32, #tpu.memory_space<vmem>>, vector<2x32xf32>
      tpu.vector_store %arg8[%c0_71, %c0_72], %144 {strides = array<i32>} : memref<2x32xf32, #tpu.memory_space<vmem>>, vector<2x32xf32>,
      %cst_73 = arith.constant 0.000000e+00 : f32
      %146 = vector.broadcast %cst_73 : f32 to vector<6x32xf32>
      %c0_74 = arith.constant 0 : index
      %c0_75 = arith.constant 0 : index
      %147 = vector.load %arg9[%c0_74, %c0_75] : memref<14x32xf32, #tpu.memory_space<vmem>>, vector<6x32xf32>
      tpu.vector_store %arg9[%c0_74, %c0_75], %146 {strides = array<i32>} : memref<14x32xf32, #tpu.memory_space<vmem>>, vector<6x32xf32>,
    } else {
    }
    %c0 = arith.constant 0 : index
    %c0_1 = arith.constant 0 : index
    %3 = vector.load %arg1[%c0, %c0_1] : memref<8x32xf32, #tpu.memory_space<vmem>>, vector<8x32xf32>
    %4 = arith.truncf %3 : vector<8x32xf32> to vector<8x32xbf16>
    %c0_2 = arith.constant 0 : index
    %c0_3 = arith.constant 0 : index
    %5 = vector.load %arg3[%c0_2, %c0_3] : memref<32x64xbf16, #tpu.memory_space<vmem>>, vector<32x64xbf16>
    %cst = arith.constant dense<0.000000e+00> : vector<8x64xf32>
    %6 = tpu.matmul %4, %5, %cst {dimension_numbers = #tpu.dot_dimension_numbers<[1], [0], [0], [1], [0, 0, 1, 1], [], []>} : vector<8x32xbf16>, vector<32x64xbf16>, vector<8x64xf32> -> vector<8x64xf32>
    %c0_4 = arith.constant 0 : index
    %c0_5 = arith.constant 0 : index
    %7 = vector.load %arg6[%c0_4, %c0_5] : memref<8x64xf32, #tpu.memory_space<vmem>>, vector<1x64xf32>
    %8 = vector.broadcast %7 : vector<1x64xf32> to vector<8x64xf32>
    %9 = arith.addf %6, %8 : vector<8x64xf32>
    %10 = vector.extract_strided_slice %9 {offsets = [0, 0], sizes = [8, 32], strides = [1, 1]} : vector<8x64xf32> to vector<8x32xf32>
    %11 = vector.extract_strided_slice %9 {offsets = [0, 32], sizes = [8, 32], strides = [1, 1]} : vector<8x64xf32> to vector<8x32xf32>
    %cst_6 = arith.constant 5.000000e-01 : f32
    %12 = vector.broadcast %cst_6 : f32 to vector<8x32xf32>
    %13 = arith.mulf %12, %11 : vector<8x32xf32>
    %cst_7 = arith.constant 4.471500e-02 : f32
    %14 = vector.broadcast %cst_7 : f32 to vector<8x32xf32>
    %15 = arith.mulf %14, %11 : vector<8x32xf32>
    %16 = arith.mulf %15, %11 : vector<8x32xf32>
    %17 = arith.mulf %16, %11 : vector<8x32xf32>
    %18 = arith.addf %11, %17 : vector<8x32xf32>
    %cst_8 = arith.constant 0.797884583 : f32
    %19 = vector.broadcast %cst_8 : f32 to vector<8x32xf32>
    %20 = arith.mulf %19, %18 : vector<8x32xf32>
    %21 = math.tanh %20 : vector<8x32xf32>
    %cst_9 = arith.constant 1.000000e+00 : f32
    %22 = vector.broadcast %cst_9 : f32 to vector<8x32xf32>
    %23 = arith.addf %22, %21 : vector<8x32xf32>
    %24 = arith.mulf %13, %23 : vector<8x32xf32>
    %c6 = arith.constant 6 : index
    %c0_10 = arith.constant 0 : index
    %25 = vector.load %arg9[%c6, %c0_10] : memref<14x32xf32, #tpu.memory_space<vmem>>, vector<8x32xf32>
    tpu.vector_store %arg9[%c6, %c0_10], %10 {strides = array<i32>} : memref<14x32xf32, #tpu.memory_space<vmem>>, vector<8x32xf32>,
    %c1 = arith.constant 1 : index
    %c0_11 = arith.constant 0 : index
    %26 = vector.load %arg6[%c1, %c0_11] : memref<8x64xf32, #tpu.memory_space<vmem>>, vector<1x32xf32>
    %c0_12 = arith.constant 0 : index
    %c0_13 = arith.constant 0 : index
    %27 = vector.load %arg9[%c0_12, %c0_13] : memref<14x32xf32, #tpu.memory_space<vmem>>, vector<8x32xf32>
    %c2 = arith.constant 2 : index
    %c0_14 = arith.constant 0 : index
    %28 = vector.load %arg6[%c2, %c0_14] : memref<8x64xf32, #tpu.memory_space<vmem>>, vector<1x32xf32>
    %29 = vector.broadcast %28 : vector<1x32xf32> to vector<8x32xf32>
    %30 = arith.mulf %27, %29 : vector<8x32xf32>
    %31 = vector.broadcast %26 : vector<1x32xf32> to vector<8x32xf32>
    %32 = arith.addf %31, %30 : vector<8x32xf32>
    %c2_15 = arith.constant 2 : index
    %c0_16 = arith.constant 0 : index
    %33 = vector.load %arg9[%c2_15, %c0_16] : memref<14x32xf32, #tpu.memory_space<vmem>>, vector<8x32xf32>
    %c3 = arith.constant 3 : index
    %c0_17 = arith.constant 0 : index
    %34 = vector.load %arg6[%c3, %c0_17] : memref<8x64xf32, #tpu.memory_space<vmem>>, vector<1x32xf32>
    %35 = vector.broadcast %34 : vector<1x32xf32> to vector<8x32xf32>
    %36 = arith.mulf %33, %35 : vector<8x32xf32>
    %37 = arith.addf %32, %36 : vector<8x32xf32>
    %c4 = arith.constant 4 : index
    %c0_18 = arith.constant 0 : index
    %38 = vector.load %arg9[%c4, %c0_18] : memref<14x32xf32, #tpu.memory_space<vmem>>, vector<8x32xf32>
    %c4_19 = arith.constant 4 : index
    %c0_20 = arith.constant 0 : index
    %39 = vector.load %arg6[%c4_19, %c0_20] : memref<8x64xf32, #tpu.memory_space<vmem>>, vector<1x32xf32>
    %40 = vector.broadcast %39 : vector<1x32xf32> to vector<8x32xf32>
    %41 = arith.mulf %38, %40 : vector<8x32xf32>
    %42 = arith.addf %37, %41 : vector<8x32xf32>
    %c6_21 = arith.constant 6 : index
    %c0_22 = arith.constant 0 : index
    %43 = vector.load %arg9[%c6_21, %c0_22] : memref<14x32xf32, #tpu.memory_space<vmem>>, vector<8x32xf32>
    %c5 = arith.constant 5 : index
    %c0_23 = arith.constant 0 : index
    %44 = vector.load %arg6[%c5, %c0_23] : memref<8x64xf32, #tpu.memory_space<vmem>>, vector<1x32xf32>
    %45 = vector.broadcast %44 : vector<1x32xf32> to vector<8x32xf32>
    %46 = arith.mulf %43, %45 : vector<8x32xf32>
    %47 = arith.addf %42, %46 : vector<8x32xf32>
    %c8 = arith.constant 8 : index
    %c0_24 = arith.constant 0 : index
    %48 = vector.load %arg9[%c8, %c0_24] : memref<14x32xf32, #tpu.memory_space<vmem>>, vector<6x32xf32>
    %c0_25 = arith.constant 0 : index
    %c0_26 = arith.constant 0 : index
    %49 = vector.load %arg9[%c0_25, %c0_26] : memref<14x32xf32, #tpu.memory_space<vmem>>, vector<6x32xf32>
    tpu.vector_store %arg9[%c0_25, %c0_26], %48 {strides = array<i32>} : memref<14x32xf32, #tpu.memory_space<vmem>>, vector<6x32xf32>,
    %50 = arith.truncf %47 : vector<8x32xf32> to vector<8x32xbf16>
    %51 = vector.extract_strided_slice %50 {offsets = [0, 0], sizes = [8, 16], strides = [1, 1]} : vector<8x32xbf16> to vector<8x16xbf16>
    %c0_27 = arith.constant 0 : index
    %c0_28 = arith.constant 0 : index
    %c0_29 = arith.constant 0 : index
    %52 = vector.load %arg4[%c0_27, %c0_28, %c0_29] : memref<2x16x32xbf16, #tpu.memory_space<vmem>>, vector<1x16x32xbf16>
    %53 = vector.shape_cast %52 : vector<1x16x32xbf16> to vector<16x32xbf16>
    %cst_30 = arith.constant dense<0.000000e+00> : vector<8x32xf32>
    %54 = tpu.matmul %51, %53, %cst_30 {dimension_numbers = #tpu.dot_dimension_numbers<[1], [0], [0], [1], [0, 0, 1, 1], [], []>} : vector<8x16xbf16>, vector<16x32xbf16>, vector<8x32xf32> -> vector<8x32xf32>
    %c7 = arith.constant 7 : index
    %c0_31 = arith.constant 0 : index
    %55 = vector.load %arg6[%c7, %c0_31] : memref<8x64xf32, #tpu.memory_space<vmem>>, vector<1x32xf32>
    %56 = vector.broadcast %55 : vector<1x32xf32> to vector<8x32xf32>
    %57 = arith.addf %54, %56 : vector<8x32xf32>
    %58 = vector.extract_strided_slice %57 {offsets = [0, 0], sizes = [8, 16], strides = [1, 1]} : vector<8x32xf32> to vector<8x16xf32>
    %59 = vector.extract_strided_slice %57 {offsets = [0, 16], sizes = [8, 16], strides = [1, 1]} : vector<8x32xf32> to vector<8x16xf32>
    %60 = vector.extract_strided_slice %50 {offsets = [0, 16], sizes = [8, 16], strides = [1, 1]} : vector<8x32xbf16> to vector<8x16xbf16>
    %c1_32 = arith.constant 1 : index
    %c0_33 = arith.constant 0 : index
    %c0_34 = arith.constant 0 : index
    %61 = vector.load %arg4[%c1_32, %c0_33, %c0_34] : memref<2x16x32xbf16, #tpu.memory_space<vmem>>, vector<1x16x32xbf16>
    %62 = vector.shape_cast %61 : vector<1x16x32xbf16> to vector<16x32xbf16>
    %cst_35 = arith.constant dense<0.000000e+00> : vector<8x32xf32>
    %63 = tpu.matmul %60, %62, %cst_35 {dimension_numbers = #tpu.dot_dimension_numbers<[1], [0], [0], [1], [0, 0, 1, 1], [], []>} : vector<8x16xbf16>, vector<16x32xbf16>, vector<8x32xf32> -> vector<8x32xf32>
    %c7_36 = arith.constant 7 : index
    %c32 = arith.constant 32 : index
    %64 = vector.load %arg6[%c7_36, %c32] : memref<8x64xf32, #tpu.memory_space<vmem>>, vector<1x32xf32>
    %65 = vector.broadcast %64 : vector<1x32xf32> to vector<8x32xf32>
    %66 = arith.addf %63, %65 : vector<8x32xf32>
    %67 = vector.extract_strided_slice %66 {offsets = [0, 0], sizes = [8, 16], strides = [1, 1]} : vector<8x32xf32> to vector<8x16xf32>
    %68 = vector.extract_strided_slice %66 {offsets = [0, 16], sizes = [8, 16], strides = [1, 1]} : vector<8x32xf32> to vector<8x16xf32>
    %69 = tpu.concatenate %58, %67 in 1 : vector<8x16xf32>, vector<8x16xf32> -> vector<8x32xf32>
    %70 = tpu.concatenate %59, %68 in 1 : vector<8x16xf32>, vector<8x16xf32> -> vector<8x32xf32>
    %cst_37 = arith.constant 0.000000e+00 : f32
    %71 = vector.broadcast %cst_37 : f32 to vector<8x32xf32>
    %72 = arith.subf %71, %69 : vector<8x32xf32>
    %73 = math.exp %72 : vector<8x32xf32>
    %cst_38 = arith.constant 1.000000e+00 : f32
    %74 = vector.broadcast %cst_38 : f32 to vector<8x32xf32>
    %75 = arith.addf %74, %73 : vector<8x32xf32>
    %76 = tpu.reciprocal %75 {approx = true} : vector<8x32xf32> -> vector<8x32xf32>
    %cst_39 = arith.constant 0.000000e+00 : f32
    %77 = vector.broadcast %cst_39 : f32 to vector<8x32xf32>
    %78 = arith.subf %77, %70 : vector<8x32xf32>
    %79 = math.exp %78 : vector<8x32xf32>
    %cst_40 = arith.constant 1.000000e+00 : f32
    %80 = vector.broadcast %cst_40 : f32 to vector<8x32xf32>
    %81 = arith.addf %80, %79 : vector<8x32xf32>
    %82 = tpu.reciprocal %81 {approx = true} : vector<8x32xf32> -> vector<8x32xf32>
    %c1_41 = arith.constant 1 : index
    %c32_42 = arith.constant 32 : index
    %83 = vector.load %arg6[%c1_41, %c32_42] : memref<8x64xf32, #tpu.memory_space<vmem>>, vector<1x32xf32>
    %84 = vector.broadcast %83 : vector<1x32xf32> to vector<8x32xf32>
    %85 = arith.mulf %82, %84 : vector<8x32xf32>
    %86 = math.exp %85 : vector<8x32xf32>
    %87 = arith.mulf %86, %86 : vector<8x32xf32>
    %c0_43 = arith.constant 0 : index
    %c0_44 = arith.constant 0 : index
    %88 = vector.load %arg2[%c0_43, %c0_44] : memref<8x1xf32, #tpu.memory_space<vmem>>, vector<8x1xf32>
    %cst_45 = arith.constant 1.000000e+00 : f32
    %89 = vector.broadcast %cst_45 : f32 to vector<8x1xf32>
    %90 = arith.subf %89, %88 : vector<8x1xf32>
    %cst_46 = arith.constant 1.000000e+00 : f32
    %91 = vector.broadcast %cst_46 : f32 to vector<8x32xf32>
    %92 = arith.subf %91, %87 : vector<8x32xf32>
    %cst_47 = arith.constant 0.000000e+00 : f32
    %93 = vector.broadcast %cst_47 : f32 to vector<8x32xf32>
    %94 = arith.maximumf %92, %93 : vector<8x32xf32>
    %95 = math.sqrt %94 : vector<8x32xf32>
    %96 = vector.broadcast %90 : vector<8x1xf32> to vector<8x32xf32>
    %97 = arith.mulf %96, %95 : vector<8x32xf32>
    %98 = vector.broadcast %88 : vector<8x1xf32> to vector<8x32xf32>
    %99 = arith.addf %98, %97 : vector<8x32xf32>
    %100 = arith.mulf %47, %76 : vector<8x32xf32>
    %101 = arith.mulf %100, %99 : vector<8x32xf32>
    %cst_48 = arith.constant 1.000000e+00 : f32
    %102 = vector.broadcast %cst_48 : f32 to vector<8x1xf32>
    %103 = arith.subf %102, %88 : vector<8x1xf32>
    %104 = vector.broadcast %103 : vector<8x1xf32> to vector<8x32xf32>
    %105 = arith.mulf %86, %104 : vector<8x32xf32>
    %c0_49 = arith.constant 0 : index
    %c0_50 = arith.constant 0 : index
    %106 = vector.load %arg8[%c0_49, %c0_50] : memref<2x32xf32, #tpu.memory_space<vmem>>, vector<2x32xf32>
    %107 = vector.extract_strided_slice %105 {offsets = [0, 0], sizes = [2, 32], strides = [1, 1]} : vector<8x32xf32> to vector<2x32xf32>
    %108 = arith.mulf %107, %106 : vector<2x32xf32>
    %109 = vector.extract_strided_slice %101 {offsets = [0, 0], sizes = [2, 32], strides = [1, 1]} : vector<8x32xf32> to vector<2x32xf32>
    %110 = arith.addf %108, %109 : vector<2x32xf32>
    %111 = vector.extract_strided_slice %24 {offsets = [0, 0], sizes = [2, 32], strides = [1, 1]} : vector<8x32xf32> to vector<2x32xf32>
    %112 = arith.mulf %110, %111 : vector<2x32xf32>
    %c0_51 = arith.constant 0 : index
    %c0_52 = arith.constant 0 : index
    %113 = vector.load %arg10[%c0_51, %c0_52] : memref<8x32xf32, #tpu.memory_space<vmem>>, vector<2x32xf32>
    tpu.vector_store %arg10[%c0_51, %c0_52], %112 {strides = array<i32>} : memref<8x32xf32, #tpu.memory_space<vmem>>, vector<2x32xf32>,
    %114 = vector.extract_strided_slice %105 {offsets = [2, 0], sizes = [2, 32], strides = [1, 1]} : vector<8x32xf32> to vector<2x32xf32>
    %115 = arith.mulf %114, %110 : vector<2x32xf32>
    %116 = vector.extract_strided_slice %101 {offsets = [2, 0], sizes = [2, 32], strides = [1, 1]} : vector<8x32xf32> to vector<2x32xf32>
    %117 = arith.addf %115, %116 : vector<2x32xf32>
    %118 = vector.extract_strided_slice %24 {offsets = [2, 0], sizes = [2, 32], strides = [1, 1]} : vector<8x32xf32> to vector<2x32xf32>
    %119 = arith.mulf %117, %118 : vector<2x32xf32>
    %c2_53 = arith.constant 2 : index
    %c0_54 = arith.constant 0 : index
    %120 = vector.load %arg10[%c2_53, %c0_54] : memref<8x32xf32, #tpu.memory_space<vmem>>, vector<2x32xf32>
    tpu.vector_store %arg10[%c2_53, %c0_54], %119 {strides = array<i32>} : memref<8x32xf32, #tpu.memory_space<vmem>>, vector<2x32xf32>,
    %121 = vector.extract_strided_slice %105 {offsets = [4, 0], sizes = [2, 32], strides = [1, 1]} : vector<8x32xf32> to vector<2x32xf32>
    %122 = arith.mulf %121, %117 : vector<2x32xf32>
    %123 = vector.extract_strided_slice %101 {offsets = [4, 0], sizes = [2, 32], strides = [1, 1]} : vector<8x32xf32> to vector<2x32xf32>
    %124 = arith.addf %122, %123 : vector<2x32xf32>
    %125 = vector.extract_strided_slice %24 {offsets = [4, 0], sizes = [2, 32], strides = [1, 1]} : vector<8x32xf32> to vector<2x32xf32>
    %126 = arith.mulf %124, %125 : vector<2x32xf32>
    %c4_55 = arith.constant 4 : index
    %c0_56 = arith.constant 0 : index
    %127 = vector.load %arg10[%c4_55, %c0_56] : memref<8x32xf32, #tpu.memory_space<vmem>>, vector<2x32xf32>
    tpu.vector_store %arg10[%c4_55, %c0_56], %126 {strides = array<i32>} : memref<8x32xf32, #tpu.memory_space<vmem>>, vector<2x32xf32>,
    %128 = vector.extract_strided_slice %105 {offsets = [6, 0], sizes = [2, 32], strides = [1, 1]} : vector<8x32xf32> to vector<2x32xf32>
    %129 = arith.mulf %128, %124 : vector<2x32xf32>
    %130 = vector.extract_strided_slice %101 {offsets = [6, 0], sizes = [2, 32], strides = [1, 1]} : vector<8x32xf32> to vector<2x32xf32>
    %131 = arith.addf %129, %130 : vector<2x32xf32>
    %132 = vector.extract_strided_slice %24 {offsets = [6, 0], sizes = [2, 32], strides = [1, 1]} : vector<8x32xf32> to vector<2x32xf32>
    %133 = arith.mulf %131, %132 : vector<2x32xf32>
    %c6_57 = arith.constant 6 : index
    %c0_58 = arith.constant 0 : index
    %134 = vector.load %arg10[%c6_57, %c0_58] : memref<8x32xf32, #tpu.memory_space<vmem>>, vector<2x32xf32>
    tpu.vector_store %arg10[%c6_57, %c0_58], %133 {strides = array<i32>} : memref<8x32xf32, #tpu.memory_space<vmem>>, vector<2x32xf32>,
    %c0_59 = arith.constant 0 : index
    %c0_60 = arith.constant 0 : index
    %135 = vector.load %arg8[%c0_59, %c0_60] : memref<2x32xf32, #tpu.memory_space<vmem>>, vector<2x32xf32>
    tpu.vector_store %arg8[%c0_59, %c0_60], %131 {strides = array<i32>} : memref<2x32xf32, #tpu.memory_space<vmem>>, vector<2x32xf32>,
    %c0_61 = arith.constant 0 : index
    %c0_62 = arith.constant 0 : index
    %136 = vector.load %arg10[%c0_61, %c0_62] : memref<8x32xf32, #tpu.memory_space<vmem>>, vector<8x32xf32>
    %137 = arith.truncf %136 : vector<8x32xf32> to vector<8x32xbf16>
    %c0_63 = arith.constant 0 : index
    %c0_64 = arith.constant 0 : index
    %138 = vector.load %arg5[%c0_63, %c0_64] : memref<32x32xbf16, #tpu.memory_space<vmem>>, vector<32x32xbf16>
    %cst_65 = arith.constant dense<0.000000e+00> : vector<8x32xf32>
    %139 = tpu.matmul %137, %138, %cst_65 {dimension_numbers = #tpu.dot_dimension_numbers<[1], [0], [0], [1], [0, 0, 1, 1], [], []>} : vector<8x32xbf16>, vector<32x32xbf16>, vector<8x32xf32> -> vector<8x32xf32>
    %c6_66 = arith.constant 6 : index
    %c0_67 = arith.constant 0 : index
    %140 = vector.load %arg6[%c6_66, %c0_67] : memref<8x64xf32, #tpu.memory_space<vmem>>, vector<1x32xf32>
    %141 = vector.broadcast %140 : vector<1x32xf32> to vector<8x32xf32>
    %142 = arith.addf %139, %141 : vector<8x32xf32>
    %c0_68 = arith.constant 0 : index
    %c0_69 = arith.constant 0 : index
    %143 = vector.load %arg7[%c0_68, %c0_69] : memref<8x32xf32, #tpu.memory_space<vmem>>, vector<8x32xf32>
    tpu.vector_store %arg7[%c0_68, %c0_69], %142 {strides = array<i32>} : memref<8x32xf32, #tpu.memory_space<vmem>>, vector<8x32xf32>,
    return
  }
  func.func @transform_0(%arg0: i32) -> (i32, i32) {
    %c0_i32 = arith.constant 0 : i32
    %c0_i32_0 = arith.constant 0 : i32
    return %arg0, %c0_i32 : i32, i32
  }
  func.func @transform_1(%arg0: i32) -> (i32, i32) {
    %c0_i32 = arith.constant 0 : i32
    %c0_i32_0 = arith.constant 0 : i32
    return %arg0, %c0_i32 : i32, i32
  }
  func.func @transform_2(%arg0: i32) -> (i32, i32) {
    %c0_i32 = arith.constant 0 : i32
    %c0_i32_0 = arith.constant 0 : i32
    %c0_i32_1 = arith.constant 0 : i32
    return %c0_i32, %c0_i32_0 : i32, i32
  }
  func.func @transform_3(%arg0: i32) -> (i32, i32, i32) {
    %c0_i32 = arith.constant 0 : i32
    %c0_i32_0 = arith.constant 0 : i32
    %c0_i32_1 = arith.constant 0 : i32
    %c0_i32_2 = arith.constant 0 : i32
    return %c0_i32, %c0_i32_0, %c0_i32_1 : i32, i32, i32
  }
  func.func @transform_4(%arg0: i32) -> (i32, i32) {
    %c0_i32 = arith.constant 0 : i32
    %c0_i32_0 = arith.constant 0 : i32
    %c0_i32_1 = arith.constant 0 : i32
    return %c0_i32, %c0_i32_0 : i32, i32
  }
  func.func @transform_5(%arg0: i32) -> (i32, i32) {
    %c0_i32 = arith.constant 0 : i32
    %c0_i32_0 = arith.constant 0 : i32
    %c0_i32_1 = arith.constant 0 : i32
    return %c0_i32, %c0_i32_0 : i32, i32
  }
  func.func @transform_6(%arg0: i32) -> (i32, i32) {
    %c0_i32 = arith.constant 0 : i32
    %c0_i32_0 = arith.constant 0 : i32
    return %arg0, %c0_i32 : i32, i32
  }
}

</mosaic_0001>

<bundles_post_ra>
// kernel: tpu_custom_call.1
= control target key start
LH: loop header
LB: loop body
LE: loop exit
PB: predicated region body
PF: predicated region fallthrough
CT: control target
= control target key end

     0   :  { %s1306_s0 = inlined_call_operand.vmem [shape: f32[16,32], index: 0, kind: input, shape index: {}]   ;;  %s1307_s1 = inlined_call_operand.vmem [shape: f32[16,1], index: 1, kind: input, shape index: {}]   ;;  %s1308_s2 = inlined_call_operand.hbm [shape: bf16[32,64], index: 2, kind: input, shape index: {}]   ;;  %s1309_s3 = inlined_call_operand.hbm [shape: bf16[2,16,32], index: 3, kind: input, shape index: {}]   ;;  %s1310_s4 = inlined_call_operand.hbm [shape: bf16[32,32], index: 4, kind: input, shape index: {}]   ;;  %s1311_s5 = inlined_call_operand.hbm [shape: f32[8,64], index: 5, kind: input, shape index: {}]   ;;  %s1312_s6 = inlined_call_operand.hbm [shape: f32[16,32], index: 6, kind: output, shape index: {}]  }
   0x1   :  { %1313 = sst [smem:[#allocation18_spill]] %s1308_s2 }
   0x2   :  { %1314 = sst [smem:[#allocation19_spill]] %s1309_s3 }
   0x3   :  { %11 = vsyncpa [#allocation6], 0 }
   0x4   :  { %12 = vsyncpa [#allocation9], 0 }
   0x5   :  { %13 = vsyncpa [#allocation12], 0 }
   0x6   :  { %14 = vsyncpa [#allocation7], 0 }
   0x7   :  { %16 = vsyncpa [#allocation7 + $0x1], 0  ;;  %s1141_s21 = smov 0   ;;  %s1143_s22 = smov 0  }
   0x8   :  { %s1145_s23 = smov 0   ;;  %s1147_s24 = smov 0  }
   0x9 LB: > { %s1162_s25 = sadd.s32 4294967295, %s1093_s24   ;;  %s733_s26 = sadd.s32 4294967294, %s1093_s24   ;;  %s1093_s24 = sphi %s1147_s24, %s1324_s24   ;;  %s1089_s23 = sphi %s1145_s23, %s1323_s23   ;;  %s1085_s22 = sphi %s1143_s22, %s1322_s22   ;;  %s1081_s21 = sphi %s1141_s21, %s1321_s21  }
   0xa   : > { %s1166_s27 = sadd.s32 1, %s1093_s24   ;;  %s165_s28 = sadd.s32 1, %s1089_s23 }
   0xb   : > { %s162_s29 = ssub.s32 %s1093_s24, %s1166_s27  ;;  %p175_p0 = scmp.ne.s32.totalorder %s1089_s23, %s1085_s22 }
   0xc   : > { %p163_p1 = scmp.eq.s32.totalorder %s162_s29, 0  ;;  %p176_p2 = scmp.eq.s32.totalorder %s1162_s25, 1 }
   0xd   : > { %p181_p3 = scmp.ne.s32.totalorder %s1085_s22, %s1081_s21  ;;  %p182_p4 = scmp.eq.s32.totalorder %s733_s26, 1 }
   0xe   : > { %s1177_s30 = scalar_select %p163_p1, %s1089_s23, %s165_s28  }
   0xf   : > { %p1179_p5 = por %p176_p2, %p175_p0  ;;  %p1183_p6 = por %p182_p4, %p181_p3 }
  0x10   : > { %p734_p7 = scmp.ge.s32.totalorder %s1093_s24, 1  ;;  %p189_p8 = scmp.lt.s32.totalorder %s1093_s24, 3 }
  0x11   : > { %p735_p9 = scmp.ne.s32.totalorder %s1162_s25, 0  ;;  %p822_p10 = scmp.eq.s32.totalorder %s1162_s25, 0 }
  0x12   : > { %p1191_p11 = pnand %p734_p7, %p189_p8  ;;  %s1318_s3 = sld [smem:[#allocation19_spill]] }
  0x13   : > { %s1319_s2 = sld [smem:[#allocation18_spill]]  ;;  %s1095_s17 = smov [#allocation8]  }
  0x14   : > { %p805_p12 = pneg %p1191_p11  ;;  %s216_s18 = sshll.u32 %s1095_s17, 4  ;;  %s217_s18 = int_to_ptr.vmem [resolvable:$true] %s216_s18 }
  0x15   : > { %s1096_s19 = smov 64   ;;  %s1097_s20 = smov 4  }
  0x16   : > { %p1205_p13 = pnand %p822_p10, %p805_p12  ;;  %s1098_s26 = smov [#allocation5]  }
  0x17   : > { %s202_s28 = sshll.u32 %s1098_s26, 4  ;;  %s228_s11 = sshll.u32 %s1310_s4, 4  ;;  %s203_s28 = int_to_ptr.vmem [resolvable:$true] %s202_s28  ;;  %s229_s11 = int_to_ptr.hbm [resolvable:$true] %s228_s11 }
  0x18   : > { %s214_s12 = sshll.u32 %s1318_s3, 4  ;;  %s243_s17 = sshll.u32 %s1311_s5, 4  ;;  %s215_s12 = int_to_ptr.hbm [resolvable:$true] %s214_s12  ;;  %s244_s17 = int_to_ptr.hbm [resolvable:$true] %s243_s17 }
  0x19   : > { %s200_s15 = sshll.u32 %s1319_s2, 4  ;;  %s1099_s2 = smov [#allocation10]   ;;  %s201_s15 = int_to_ptr.hbm [resolvable:$true] %s200_s15 }
  0x1a   : > { %811 = dma.hbm_to_vmem [thread:$0]  (!%p1205_p13), %s215_s12, 256, %s217_s18, [#allocation9], %s1096_s19, %s1096_s19, %s1097_s20  }
  0x1b   : > { %808 = dma.hbm_to_vmem [thread:$0]  (!%p1205_p13), %s201_s15, 256, %s203_s28, [#allocation6], %s1096_s19, %s1096_s19, %s1097_s20  }
  0x1c   : > { %s230_s3 = sshll.u32 %s1099_s2, 4  ;;  %s1100_s12 = smov [#allocation11]   ;;  %s231_s3 = int_to_ptr.vmem [resolvable:$true] %s230_s3 }
  0x1d   : > { %814 = dma.hbm_to_vmem [thread:$0]  (!%p1205_p13), %s229_s11, 256, %s231_s3, [#allocation9], %s1096_s19, %s1096_s19, %s1097_s20  }
  0x1e   : > { %s245_s18 = sshll.u32 %s1100_s12, 4  ;;  %272 = sbr.rel (%p1191_p11) target bundleno = 746 (0x2ea), region = 44  ;;  %s246_s18 = int_to_ptr.vmem [resolvable:$true] %s245_s18 }
  0x1f   : > { %817 = dma.hbm_to_vmem [thread:$0]  (!%p1205_p13), %s244_s17, 128, %s246_s18, [#allocation12]  }
  0x23   : > { %1064 = dma.done.wait (%p822_p10), [#allocation6], 256  }
  0x24   : > { %1066 = vsyncadd (%p822_p10), [#allocation6], 4294967040 }
  0x25   : > { %1068 = dma.done.wait (%p822_p10), [#allocation9], 512  }
  0x26   : > { %1070 = vsyncadd (%p822_p10), [#allocation9], 4294966784 }
  0x27   : > { %1072 = dma.done.wait (%p822_p10), [#allocation12], 128  }
  0x28   : > { %1074 = vsyncadd (%p822_p10), [#allocation12], 4294967168  ;;  %s318_s2 = sand.u32 1, %s1085_s22   ;;  %p321_p0 = scmp.lt.s32.totalorder %s1162_s25, 1 }
  0x29   : > { %s1241_s3 = sshll.u32 %s318_s2, 3  ;;  %333 = sbr.rel (%p735_p9) target bundleno = 49 (0x31), region = 64 }
  0x2a   : > { %s322_s9 = scalar_select %p321_p0, %s1162_s25, 1 }
  0x2b   : > { %s320_s10 = scalar_lea.vmem [#allocation13], %s1241_s3 }
  0x2c   : > { %s746_s15 = sshll.u32 %s322_s9, 3 }
  0x2d   : > { %s324_s20 = scalar_lea.vmem %s1306_s0, %s746_s15  ;;  %s1250_s29 = scalar_lea.vmem %s1307_s1, %s746_s15 }
  0x2e   : > { %vm334_vm0 = vcmask 254976   ;;  %vm336_vm1 = vcmask 259072   ;;  %v1101_v0 = vmov 0.0  }
  0x2f   : > { %335 = vst.msk [vmem:[#allocation2] sm:$0x3] %vm334_vm0, %v1101_v0 }
  0x30   : > { %337 = vst.msk [vmem:[#allocation3] sm:$0x3f] %vm336_vm1, %v1101_v0 }
  0x31 PF: > { %v782_v1 = vld [vmem:[#allocation5 + $0x8] sm:$0xff]  ;;  %v781_v2 = vld [vmem:[#allocation5] sm:$0xff]  ;;  %vm358_vm2 = vcmask 261120   ;;  %v783_v5 = vld [vmem:[#allocation8] sm:$0xff]  ;;  %vm408_vm3 = vcmask 259072   ;;  %vm421_vm4 = vcmask 130048  }
  0x32   : > { %v338_v3 = vld [vmem:[%s324_s20] sm:$0xff]  ;;  %368 = vmatpush.bf16.msra.mxu0 %v782_v1  ;;  %432 = vmatpush.bf16.msra.mxu1 %v783_v5  ;;  %v784_v6 = vld [vmem:[#allocation8 + $0x8] sm:$0xff]  ;;  %v876_v7 = vld [vmem:[#allocation11] ss:$0 sm:$0xff]  ;;  %s1102_s11 = smov 112   ;;  %s1103_s13 = smov 96  }
  0x33   : > { %v339_v4 = vpack.c.bf16 %v338_v3, %v338_v3  ;;  %466 = vmatpush.bf16.msra.mxu2 %v784_v6  ;;  %v877_v10 = vld [vmem:[#allocation11 + $0x2] ss:$0 sm:$0xff]  ;;  %v878_v12 = vld [vmem:[#allocation11 + $0x1] ss:$0 sm:$0xff]  ;;  %v879_v13 = vld [vmem:[#allocation11 + $0x3] ss:$0 sm:$0xff] }
  0x34   : > { %v880_v18 = vld [vmem:[#allocation11 + $0x4] ss:$0 sm:$0xff]  ;;  %v881_v22 = vld [vmem:[#allocation11 + $0x5] ss:$0 sm:$0xff]  ;;  %v882_v32 = vld [vmem:[#allocation11 + $0x7] ss:$0 sm:$0xff] }
  0x35   : > { %v502_v34 = vld [vmem:[%s1250_s29] sm:$0xff]  ;;  %v1104_v36 = vmov 0   ;;  %v883_v43 = vld [vmem:[#allocation11 + $0x1] ss:$0 sm:$0xff]  ;;  %s1105_s14 = smov 16   ;;  %vm541_vm7 = vcmask 254976  }
  0x36   : > { %369 = vmatpush.bf16.msra.mxu0 %v781_v2  ;;  %875 = vset.pattern.permute.xlu0 %v1104_v36  ;;  %v503_v52 = vsub.f32 1.0, %v502_v34  ;;  %vm549_vm8 = vcmask 257026   ;;  %vm557_vm9 = vcmask 259076   ;;  %vm565_vm10 = vcmask 261126   ;;  %s778_s17 = sshll.u32 %s1162_s25, 3  ;;  %s618_s15 = sshll.u32 %s320_s10, 4  ;;  %s619_s15 = int_to_ptr.vmem [resolvable:$true] %s618_s15 }
  0x37   : > { %874 = vset.pattern.permute.xlu2 %v1104_v36  ;;  %s616_s9 = scalar_lea.hbm %s1312_s6, %s778_s17  ;;  %s606_s19 = scalar_lea.sflag [#allocation7], %s318_s2 }
  0x38   : > { %s620_s16 = sshll.u32 %s616_s9, 4  ;;  %s1039_s29 = scalar_lea.hbm %s1312_s6, 16  ;;  %s621_s16 = int_to_ptr.hbm [resolvable:$true] %s620_s16 }
  0x39   : > { %757 = vmatmul.msk.bf16.vlgmr.msra.gmra.mxu0 %vm358_vm2, %v339_v4  ;;  %s1033_s20 = sshra.s32 %s621_s16, 4  ;;  %s1034_s20 = int_to_ptr.hbm [resolvable:$true] %s1033_s20 }
  0x3a   : > { %s1035_s25 = scalar_lea.hbm %s1034_s20, 8  ;;  %p1040_p4 = scmp.lt.s32.totalorder %s1034_s20, %s1312_s6 }
  0x3b   : > { %p1036_p1 = scmp.ne.s32.totalorder %s1034_s20, %s1035_s25  ;;  %p1041_p7 = scmp.lt.s32.totalorder %s1039_s29, %s1035_s25 }
  0x3d   : > { %p1037_p2 = pnand %p1036_p1, %p1179_p5  ;;  %p1042_p8 = por %p1041_p7, %p1040_p4 }
  0x3f   : > { %p1038_p3 = pneg %p1037_p2 }
  0x41   : > { %p1043_p9 = pnand %p1042_p8, %p1038_p3 }
  0xb6   : > { %v371_v8 = vpop.f32.mrf.mxu0 }
  0xb7   : > { %v372_v9 = vadd.f32 %v876_v7, %v371_v8 }
  0xb9   : > { %384 = vst.msk [vmem:[#allocation3 + $0x6] sm:$0xff] %vm358_vm2, %v372_v9  ;;  %v376_v33 = vmul.f32 0.044715, %v372_v9  ;;  %v375_v47 = vmul.f32 0.5, %v372_v9 }
  0xbb   : > { %v377_v35 = vmul.f32 %v376_v33, %v372_v9 }
  0xbd   : > { %v378_v37 = vmul.f32 %v377_v35, %v372_v9 }
  0xbe   : > { %v373_v11 = vpop.f32.mrf.mxu0 }
  0xbf   : > { %v379_v39 = vadd.f32 %v378_v37, %v372_v9 }
  0xc0   : > { %v386_v14 = vld [vmem:[#allocation3] sm:$0xff]  ;;  %v407_v19 = vld [vmem:[#allocation3 + $0x8] sm:$0x3f] }
  0xc1   : > { %v392_v15 = vld [vmem:[#allocation3 + $0x2] sm:$0xff]  ;;  %v389_v17 = vmul.f32 %v877_v10, %v386_v14  ;;  %v380_v41 = vmul.f32 0.7978846, %v379_v39 }
  0xc2   : > { %v397_v16 = vld [vmem:[#allocation3 + $0x4] sm:$0xff]  ;;  %v395_v21 = vmul.f32 %v879_v13, %v392_v15 }
  0xc3   : > { %409 = vst.msk [vmem:[#allocation3] sm:$0x3f] %vm408_vm3, %v407_v19  ;;  %v391_v20 = vadd.f32 %v878_v12, %v389_v17  ;;  %v402_v23 = vld [vmem:[#allocation3 + $0x6] sm:$0xff]  ;;  %v400_v25 = vmul.f32 %v880_v18, %v397_v16  ;;  %885 = vtanh.f32 %v380_v41 }
  0xc4   : > { %v405_v27 = vmul.f32 %v881_v22, %v402_v23  ;;  %v785_v23 = vld [vmem:[#allocation10] sm:$0xff] }
  0xc5   : > { %v396_v24 = vadd.f32 %v395_v21, %v391_v20  ;;  %v786_v20 = vld [vmem:[#allocation10 + $0x8] sm:$0xff] }
  0xc6   : > { %597 = vmatpush.bf16.msra.mxu3 %v786_v20 }
  0xc7   : > { %v401_v26 = vadd.f32 %v400_v25, %v396_v24 }
  0xc9   : > { %v1257_v28 = vadd.f32 %v405_v27, %v401_v26  ;;  %v886_v45 = vpop.eup %885  ;;  %v533_v27 = vld [vmem:[#allocation2] sm:$0x3] }
  0xca   : > { %v382_v46 = vadd.f32 1.0, %v886_v45  ;;  %598 = vmatpush.bf16.msra.mxu3 %v785_v23 }
  0xcb   : > { %v410_v29 = vpack.c.bf16 %v1257_v28, %v1257_v28 }
  0xcc   : > { %v383_v48 = vmul.f32 %v382_v46, %v375_v47 }
  0xcd   : > { %762 = vmatmul.msk.bf16.vlgmr.msra.gmra.mxu1 %vm421_vm4, %v410_v29  ;;  %v442_v30 = vunpack.c.l.b16 %v410_v29 }
  0xcf   : > { %v443_v31 = vpack.c.b16 %v442_v30, %v442_v30 }
  0xd1   : > { %444 = vrot.lane.b32.xlu0 %v443_v31, %s1102_s11 }
  0xd9   : > { %453 = vrot.lane.b32.xlu0 %v882_v32, %s1103_s13 }
  0xe1   : > { %526 = vperm.xlu0 %875, %v502_v34  }
 0x143   : > { %v445_v38 = vpop.permute.xlu0 %444 }
 0x144   : > { %767 = vmatmul.msk.bf16.vlgmr.msra.gmra.mxu2 %vm421_vm4, %v445_v38 }
 0x14a   : > { %v434_v40 = vpop.f32.mrf.mxu1 }
 0x14b   : > { %v435_v42 = vadd.f32 %v882_v32, %v434_v40  ;;  %v454_v49 = vpop.permute.xlu0 %453 }
 0x14d   : > { %478 = vrot.lane.b32.xlu1 %v435_v42, %s1102_s11 }
 0x152   : > { %v436_v44 = vpop.f32.mrf.mxu1 }
 0x153   : > { %v527_v24 = vpop.permute.xlu0 %526 }
 0x155   : > { %495 = vrot.lane.b32.xlu1 %v883_v43, %s1103_s13 }
 0x15d   : > { %537 = vrot.lane.b32.xlu1 %v383_v48, %s1103_s13 }
 0x1bf   : > { %v479_v54 = vpop.permute.xlu1 %478 }
 0x1c7   : > { %v468_v50 = vpop.f32.mrf.mxu2  ;;  %v496_v61 = vpop.permute.xlu1 %495 }
 0x1c8   : > { %v469_v51 = vadd.f32 %v468_v50, %v454_v49  ;;  %v884_v49 = vld [vmem:[#allocation11 + $0x6] ss:$0 sm:$0xff] }
 0x1ca   : > { %473 = vrot.lane.b32.xlu2 %v469_v51, %s1105_s14  ;;  %v481_v55 = vsel %vm421_vm4, %v479_v54, %v469_v51 }
 0x1cb   : > { %v487_v56 = vsub.f32 0.0, %v481_v55 }
 0x1cd   : > { %v488_v57 = vmul.f32 1.442695, %v487_v56 }
 0x1cf   : > { %v470_v53 = vpop.f32.mrf.mxu2  ;;  %887 = vpow2.f32 %v488_v57  ;;  %v538_v34 = vpop.permute.xlu1 %537 }
 0x1d2   : > { %520 = vperm.xlu2 %874, %v503_v52  }
 0x1d5   : > { %v888_v58 = vpop.eup %887 }
 0x1d6   : > { %v490_v59 = vadd.f32 1.0, %v888_v58 }
 0x1d8   : > { %889 = vrcp.f32 %v490_v59 }
 0x1de   : > { %v890_v60 = vpop.eup %889 }
 0x1df   : > { %v498_v62 = vmul.f32 %v890_v60, %v496_v61 }
 0x1e1   : > { %v499_v63 = vmul.f32 1.442695, %v498_v62 }
 0x1e3   : > { %891 = vpow2.f32 %v499_v63 }
 0x1e9   : > { %v892_v0 = vpop.eup %891 }
 0x1ea   : > { %v501_v1 = vmul.f32 %v892_v0, %v892_v0 }
 0x1ec   : > { %v504_v2 = vsub.f32 1.0, %v501_v1 }
 0x1ee   : > { %v505_v3 = vmax.f32 %v504_v2, 0.0 }
 0x1f0   : > { %893 = vrsqrt.f32 %v505_v3  ;;  %vm513_vm5 = vcmp.eq.f32.partialorder %v505_v3, inf  ;;  %v516_v19 = vand.u32 2147483648, %v505_v3  ;;  %vm515_vm6 = vcmp.eq.f32.partialorder %v505_v3, 0.0 }
 0x1f6   : > { %v894_v4 = vpop.eup %893 }
 0x1f7   : > { %v507_v5 = vmul.f32 %v894_v4, %v505_v3 }
 0x1f9   : > { %v508_v6 = vmul.f32 %v894_v4, %v507_v5 }
 0x1fb   : > { %v509_v7 = vmul.f32 0.5, %v508_v6 }
 0x1fd   : > { %v510_v11 = vsub.f32 1.5, %v509_v7 }
 0x1ff   : > { %v511_v13 = vmul.f32 %v894_v4, %v510_v11 }
 0x201   : > { %v512_v14 = vmul.f32 %v511_v13, %v505_v3 }
 0x203   : > { %v514_v17 = vsel %vm513_vm5, %v505_v3, %v512_v14 }
 0x204   : > { %v517_v21 = vsel %vm515_vm6, %v516_v19, %v514_v17 }
 0x224   : > { %v474_v8 = vpop.permute.xlu2 %473 }
 0x225   : > { %v476_v9 = vsel %vm421_vm4, %v435_v42, %v474_v8 }
 0x226   : > { %v482_v10 = vsub.f32 0.0, %v476_v9 }
 0x228   : > { %v483_v12 = vmul.f32 1.442695, %v482_v10 }
 0x22a   : > { %895 = vpow2.f32 %v483_v12 }
 0x22c   : > { %v521_v18 = vpop.permute.xlu2 %520 }
 0x22d   : > { %v523_v22 = vmul.f32 %v521_v18, %v517_v21  ;;  %v532_v25 = vmul.f32 %v892_v0, %v521_v18 }
 0x22f   : > { %v529_v29 = vadd.f32 %v527_v24, %v523_v22  ;;  %v534_v31 = vmul.f32 %v533_v27, %v532_v25 }
 0x230   : > { %v896_v15 = vpop.eup %895 }
 0x231   : > { %v485_v16 = vadd.f32 1.0, %v896_v15 }
 0x233   : > { %897 = vrcp.f32 %v485_v16 }
 0x239   : > { %v898_v26 = vpop.eup %897 }
 0x23a   : > { %v530_v30 = vmul.f32 %v898_v26, %v1257_v28 }
 0x23c   : > { %v531_v32 = vmul.f32 %v530_v30, %v529_v29 }
 0x23e   : > { %v535_v33 = vadd.f32 %v534_v31, %v531_v32 }
 0x240   : > { %v540_v35 = vmul.f32 %v538_v34, %v535_v33  ;;  %v544_v36 = vrot.slane %v535_v33, 6 }
 0x242   : > { %542 = vst.msk [vmem:[#allocation4] sm:$0x3] %vm541_vm7, %v540_v35  ;;  %v546_v37 = vmul.f32 %v544_v36, %v532_v25 }
 0x244   : > { %v547_v38 = vadd.f32 %v546_v37, %v531_v32 }
 0x246   : > { %v548_v39 = vmul.f32 %v547_v38, %v538_v34  ;;  %v552_v40 = vrot.slane %v547_v38, 6 }
 0x248   : > { %550 = vst.msk [vmem:[#allocation4] sm:$0xc] %vm549_vm8, %v548_v39  ;;  %v554_v41 = vmul.f32 %v552_v40, %v532_v25 }
 0x24a   : > { %v555_v42 = vadd.f32 %v554_v41, %v531_v32 }
 0x24c   : > { %v556_v28 = vmul.f32 %v555_v42, %v538_v34  ;;  %v560_v43 = vrot.slane %v555_v42, 6 }
 0x24e   : > { %558 = vst.msk [vmem:[#allocation4] sm:$0x30] %vm557_vm9, %v556_v28  ;;  %v562_v44 = vmul.f32 %v560_v43, %v532_v25 }
 0x250   : > { %v563_v45 = vadd.f32 %v562_v44, %v531_v32 }
 0x252   : > { %v564_v46 = vmul.f32 %v563_v45, %v538_v34  ;;  %567 = vst.msk [vmem:[#allocation2 - $0x6] sm:$0xc0] %vm565_vm10, %v563_v45 }
 0x254   : > { %566 = vst.msk [vmem:[#allocation4] sm:$0xc0] %vm565_vm10, %v564_v46 }
 0x25b   : > { %v568_v47 = vld [vmem:[#allocation4] sm:$0xff] }
 0x25c   : > { %v569_v48 = vpack.c.bf16 %v568_v47, %v568_v47 }
 0x25e   : > { %776 = vmatmul.msk.bf16.vlgmr.msra.gmra.mxu3 %vm358_vm2, %v569_v48 }
 0x2e1   : > { %v600_v50 = vpop.f32.mrf.mxu3 }
 0x2e2   : > { %v601_v51 = vadd.f32 %v884_v49, %v600_v50 }
 0x2e4   : > { %604 = vst.msk [vmem:[%s320_s10] sm:$0xff] %vm358_vm2, %v601_v51 }
 0x2e5   : > { %1046 = shalt.err (!%p1043_p9)
}
 0x2e6   : > { %803 = dma.vmem_to_hbm [thread:$0]  (%p1179_p5), %s619_s15, 128, %s621_s16, %s606_s19  }
 0x2e9   : > { %v602_v52 = vpop.f32.mrf.mxu3 }
 0x2ea PF: > { %p830_p10 = scmp.ge.s32.totalorder %s1093_s24, 2  ;;  %s632_s2 = sand.u32 1, %s1081_s21  }
 0x2eb   : > { %s633_s3 = scalar_lea.sflag [#allocation7], %s632_s2 }
 0x2ec   : > { %p819_p11 = pnand %p830_p10, %p1183_p6 }
 0x2ee   : > { %p820_p12 = pneg %p819_p11 }
 0x2f0   : > { %1076 = dma.done.wait (%p820_p12), %s633_s3, 128  }
 0x2f1   : > { %1078 = vsyncadd (%p820_p12), %s633_s3, 4294967168  ;;  %p19_p13 = scmp.ge.s32.totalorder %s1166_s27, 4   ;;  %s1321_s21 = smov %s1085_s22 }
 0x2f2   : > { %s1322_s22 = smov %s1089_s23  ;;  %s1323_s23 = smov %s1177_s30 }
 0x2f3   : > { %s1324_s24 = smov %s1166_s27  ;;  %21 = sbr.rel (!%p19_p13) target bundleno = 9 (0x9), region = 104 }
 0x2f8   :  { %639 = vsyncpa [#allocation6], 1 }
 0x2f9   :  { %641 = vsyncpa [#allocation6 + $0x1], 1 }
 0x2fa   :  { %642 = vsyncpa [#allocation9], 1 }
 0x2fb   :  { %643 = vsyncpa [#allocation12], 1 }
 0x2fc   :  { %644 = vsyncpa [#allocation7], 1 }
 0x2fd   :  { %646 = vsyncpa [#allocation7 + $0x1], 1 }

</bundles_post_ra>
